<compile_context>
chip_gen: v5e
topology: v5e:2x2
jax: 0.10.0
libtpu: 0.0.40
codegen_flags: <defaults>
</compile_context>

<pallas_src>
import jax
import jax.numpy as jnp
from jax import lax
from jax.experimental import pallas as pl
from jax.experimental.pallas import tpu as pltpu


def _round_up(v, m):
    return (v + m - 1) // m * m


def _vmem_cap_bytes():
    """Generation-aware VMEM cap (85% of physical; 64 MiB fallback)."""
    try:
        phys = pltpu.get_tpu_info().vmem_capacity_bytes
    except Exception:
        phys = 64 << 20  # conservative (v7x per-TC size)
    return int(phys * 0.85)


def _biaffine_kernel(x_ref, w_ref, y_ref, o_ref):
    # x_ref: (1, TQ, Dx) ; w_ref: (1, Dx, Dy) ; y_ref: (1, Lp, Dy)
    # o_ref: (1, 1, TQ, Lp)
    x = x_ref[0]                                                   # [TQ, Dx]
    w = w_ref[0]                                                   # [Dx, Dy]
    y = y_ref[0]                                                   # [Lp, Dy]
    xw = jnp.dot(x, w, preferred_element_type=jnp.float32)        # [TQ, Dy] (MXU)
    # Cast xw back to the compute dtype so both operands of the dominant
    # second matmul are bf16 on v6e/v7x; accumulate in f32.
    xw = xw.astype(y.dtype)
    # NT contraction: contract last dim of both operands -> no explicit
    # transpose of the [Lp, Dy] y tile.
    s = lax.dot_general(
        xw, y,
        dimension_numbers=(((1,), (1,)), ((), ())),
        preferred_element_type=jnp.float32,
    )                                                              # [TQ, Lp] (MXU)
    o_ref[0, 0] = s.astype(o_ref.dtype)


def biaffine_forward(x, y, weight, *, n_in, scale=0.0, bias_x=True, bias_y=True,
                     compute_dtype=None, out_dtype=None):
    """Pallas Biaffine forward.

    x, y: [B, L, n_in]; weight: [n_out, n_in + bias_x, n_in + bias_y].
    Returns [B, n_out, L, L] (n_out dim squeezed when n_out == 1).
    compute_dtype: operand dtype for both matmuls (e.g. jnp.bfloat16 on
    v6e/v7x); accumulation is always float32.  out_dtype defaults to x.dtype.
    """
    B, L, nx = x.shape
    By, Ly, ny = y.shape
    assert (B, L) == (By, Ly) and nx == n_in and ny == n_in
    n_out, Dx, Dy = weight.shape
    assert Dx == n_in + int(bias_x) and Dy == n_in + int(bias_y)

    dtype = jnp.dtype(compute_dtype) if compute_dtype is not None else x.dtype
    o_dtype = jnp.dtype(out_dtype) if out_dtype is not None else x.dtype

    # Lane-aligned feature dims and 128-aligned sequence length (zero padding,
    # mathematically a no-op; padded rows/cols sliced off the output below).
    Dx_pad = _round_up(Dx, 128)
    Dy_pad = _round_up(Dy, 128)
    L_pad = _round_up(L, 128)

    def _augment(t, add_bias, d_pad):
        # [t | ones(bias) | zeros(feat pad)], then zero-pad sequence rows.
        cols = [t.astype(dtype)]
        if add_bias:
            cols.append(jnp.ones((B, L, 1), dtype=dtype))
        feat_pad = d_pad - (t.shape[-1] + int(add_bias))
        if feat_pad > 0:
            cols.append(jnp.zeros((B, L, feat_pad), dtype=dtype))
        t = jnp.concatenate(cols, axis=-1) if len(cols) > 1 else cols[0]
        if L_pad > L:
            t = jnp.pad(t, ((0, 0), (0, L_pad - L), (0, 0)))
        return t

    xp = _augment(x, bias_x, Dx_pad)                               # [B, Lp, Dx_pad]
    yp = _augment(y, bias_y, Dy_pad)                               # [B, Lp, Dy_pad]

    # Fold the scale into the weight once (trace-time skip when scale == 0).
    w_f32 = weight.astype(jnp.float32)
    if scale != 0.0:
        w_f32 = w_f32 * (1.0 / (float(n_in) ** float(scale)))
    wp = jnp.pad(w_f32.astype(dtype),
                 ((0, 0), (0, Dx_pad - Dx), (0, Dy_pad - Dy)))     # [n_out, Dx_pad, Dy_pad]

    # Query-axis tile: always a 128 multiple that divides L_pad.
    TQ = 256 if (L_pad % 256 == 0 and L_pad >= 256) else 128
    TQ = min(TQ, L_pad)

    # Explicit VMEM accounting: double-buffered x / W / y / out blocks + 25%
    # headroom for compiler-internal scratch; shrink TQ rather than clamp.
    in_item = jnp.dtype(dtype).itemsize
    out_item = jnp.dtype(o_dtype).itemsize
    cap = _vmem_cap_bytes()

    def _required(tq):
        blk = (tq * Dx_pad * in_item + Dx_pad * Dy_pad * in_item
               + L_pad * Dy_pad * in_item + tq * L_pad * out_item)
        return int(2 * blk * 1.25)

    while TQ > 128 and _required(TQ) > cap:
        TQ //= 2
    # TODO(synk): if _required(128) still exceeds cap (L >= ~8K on v7x), add a
    # key-axis grid dimension with an xw VMEM scratch instead of shrinking TQ.
    n_q = L_pad // TQ
    vmem_limit = int(min(max(_required(TQ), 32 << 20), cap))

    out = pl.pallas_call(
        _biaffine_kernel,
        out_shape=jax.ShapeDtypeStruct((B, n_out, L_pad, L_pad), o_dtype),
        grid_spec=pltpu.PrefetchScalarGridSpec(
            num_scalar_prefetch=0,
            # n_out innermost: x / y block indices are constant across the o
            # loop (no re-DMA); only the small W_o block changes per step.
            grid=(B, n_q, n_out),
            in_specs=[
                pl.BlockSpec((1, TQ, Dx_pad), lambda b, q, o: (b, q, 0)),      # x tile
                pl.BlockSpec((1, Dx_pad, Dy_pad), lambda b, q, o: (o, 0, 0)),  # W_o
                pl.BlockSpec((1, L_pad, Dy_pad), lambda b, q, o: (b, 0, 0)),   # y (full keys)
            ],
            out_specs=pl.BlockSpec((1, 1, TQ, L_pad), lambda b, q, o: (b, o, q, 0)),
        ),
        compiler_params=pltpu.CompilerParams(
            dimension_semantics=("parallel", "parallel", "parallel"),
            vmem_limit_bytes=vmem_limit,
        ),
    )(xp, wp, yp)

    if L_pad > L:
        out = out[:, :, :L, :L]
    if n_out == 1:
        out = jnp.squeeze(out, axis=1)
    return out


def _reference(x, y, weight, *, n_in, scale, bias_x, bias_y):
    xb = jnp.concatenate([x, jnp.ones_like(x[..., :1])], -1) if bias_x else x
    yb = jnp.concatenate([y, jnp.ones_like(y[..., :1])], -1) if bias_y else y
    s = jnp.einsum("bxi,oij,byj->boxy", xb, weight, yb) / (float(n_in) ** float(scale))
    if weight.shape[0] == 1:
        s = jnp.squeeze(s, axis=1)
    return s


if __name__ == "__main__":
    key = jax.random.PRNGKey(0)
    kx, ky, kw1, kw2 = jax.random.split(key, 4)

    batch, seq_len, n_in, n_out = 2, 8, 32, 2
    x = jax.random.normal(kx, (batch, seq_len, n_in), dtype=jnp.float32)
    y = jax.random.normal(ky, (batch, seq_len, n_in), dtype=jnp.float32)

    # Case 1: n_out=2, bias on both sides, scale=0 (the common config), f32.
    w1 = jax.random.normal(kw1, (n_out, n_in + 1, n_in + 1), dtype=jnp.float32)
    s1 = jax.block_until_ready(
        biaffine_forward(x, y, w1, n_in=n_in, scale=0.0, bias_x=True, bias_y=True))
    r1 = _reference(x, y, w1, n_in=n_in, scale=0.0, bias_x=True, bias_y=True)
    assert s1.shape == r1.shape, (s1.shape, r1.shape)
    assert jnp.allclose(s1, r1, atol=1e-4, rtol=1e-4)

    # Case 2: n_out=1 (squeezed), asymmetric bias, nonzero scale.
    w2 = jax.random.normal(kw2, (1, n_in + 1, n_in), dtype=jnp.float32)
    s2 = jax.block_until_ready(
        biaffine_forward(x, y, w2, n_in=n_in, scale=1.0, bias_x=True, bias_y=False))
    r2 = _reference(x, y, w2, n_in=n_in, scale=1.0, bias_x=True, bias_y=False)
    assert s2.shape == r2.shape, (s2.shape, r2.shape)
    assert jnp.allclose(s2, r2, atol=1e-4, rtol=1e-4)

    # Case 3: bf16 operands + bf16 output (v6e/v7x fast path); f32 accumulation.
    s3 = jax.block_until_ready(
        biaffine_forward(x, y, w1, n_in=n_in, scale=0.0, bias_x=True, bias_y=True,
                         compute_dtype=jnp.bfloat16, out_dtype=jnp.bfloat16))
    assert s3.shape == r1.shape and s3.dtype == jnp.bfloat16
    assert jnp.allclose(s3.astype(jnp.float32), r1, atol=1.0, rtol=0.1)

    print("KERNEL_OK")
</pallas_src>

<mosaic_0001>
module attributes {stable_mosaic.version = 11 : i64} {
  func.func @_biaffine_kernel(%arg0: i32, %arg1: i32, %arg2: i32, %arg3: memref<1x128x128xf32, #tpu.memory_space<vmem>>, %arg4: memref<1x128x128xf32, #tpu.memory_space<vmem>>, %arg5: memref<1x128x128xf32, #tpu.memory_space<vmem>>, %arg6: memref<1x1x128x128xf32, #tpu.memory_space<vmem>>) attributes {dimension_semantics = [#tpu.dimension_semantics<parallel>, #tpu.dimension_semantics<parallel>, #tpu.dimension_semantics<parallel>], iteration_bounds = array<i64: 2, 1, 2>, scalar_prefetch = 0 : i64, scratch_operands = 0 : i64, tpu.core_type = #tpu.core_type<tc>, window_params = [{transform_indices = @transform_0, window_bounds = array<i64: 1, 128, 128>}, {transform_indices = @transform_1, window_bounds = array<i64: 1, 128, 128>}, {transform_indices = @transform_2, window_bounds = array<i64: 1, 128, 128>}, {transform_indices = @transform_3, window_bounds = array<i64: 1, 1, 128, 128>}]} {
    %c0 = arith.constant 0 : index
    %c0_0 = arith.constant 0 : index
    %c0_1 = arith.constant 0 : index
    %0 = vector.load %arg3[%c0, %c0_0, %c0_1] : memref<1x128x128xf32, #tpu.memory_space<vmem>>, vector<1x128x128xf32>
    %1 = vector.shape_cast %0 : vector<1x128x128xf32> to vector<128x128xf32>
    %c0_2 = arith.constant 0 : index
    %c0_3 = arith.constant 0 : index
    %c0_4 = arith.constant 0 : index
    %2 = vector.load %arg4[%c0_2, %c0_3, %c0_4] : memref<1x128x128xf32, #tpu.memory_space<vmem>>, vector<1x128x128xf32>
    %3 = vector.shape_cast %2 : vector<1x128x128xf32> to vector<128x128xf32>
    %c0_5 = arith.constant 0 : index
    %c0_6 = arith.constant 0 : index
    %c0_7 = arith.constant 0 : index
    %4 = vector.load %arg5[%c0_5, %c0_6, %c0_7] : memref<1x128x128xf32, #tpu.memory_space<vmem>>, vector<1x128x128xf32>
    %5 = vector.shape_cast %4 : vector<1x128x128xf32> to vector<128x128xf32>
    %cst = arith.constant dense<0.000000e+00> : vector<128x128xf32>
    %6 = tpu.matmul %1, %3, %cst {dimension_numbers = #tpu.dot_dimension_numbers<[1], [0], [0], [1], [0, 0, 1, 1], [], []>} : vector<128x128xf32>, vector<128x128xf32>, vector<128x128xf32> -> vector<128x128xf32>
    %cst_8 = arith.constant dense<0.000000e+00> : vector<128x128xf32>
    %7 = tpu.matmul %6, %5, %cst_8 {dimension_numbers = #tpu.dot_dimension_numbers<[1], [1], [0], [0], [0, 0, 1, 0], [], []>} : vector<128x128xf32>, vector<128x128xf32>, vector<128x128xf32> -> vector<128x128xf32>
    %c0_9 = arith.constant 0 : index
    %c0_10 = arith.constant 0 : index
    %c0_11 = arith.constant 0 : index
    %c0_12 = arith.constant 0 : index
    %8 = vector.load %arg6[%c0_9, %c0_10, %c0_11, %c0_12] : memref<1x1x128x128xf32, #tpu.memory_space<vmem>>, vector<1x1x128x128xf32>
    %9 = vector.shape_cast %8 : vector<1x1x128x128xf32> to vector<128x128xf32>
    %10 = vector.shape_cast %7 : vector<128x128xf32> to vector<1x1x128x128xf32>
    tpu.vector_store %arg6[%c0_9, %c0_10, %c0_11, %c0_12], %10 {strides = array<i32>} : memref<1x1x128x128xf32, #tpu.memory_space<vmem>>, vector<1x1x128x128xf32>,
    return
  }
  func.func @transform_0(%arg0: i32, %arg1: i32, %arg2: i32) -> (i32, i32, i32) {
    %c0_i32 = arith.constant 0 : i32
    %c0_i32_0 = arith.constant 0 : i32
    return %arg0, %arg1, %c0_i32 : i32, i32, i32
  }
  func.func @transform_1(%arg0: i32, %arg1: i32, %arg2: i32) -> (i32, i32, i32) {
    %c0_i32 = arith.constant 0 : i32
    %c0_i32_0 = arith.constant 0 : i32
    %c0_i32_1 = arith.constant 0 : i32
    return %arg2, %c0_i32, %c0_i32_0 : i32, i32, i32
  }
  func.func @transform_2(%arg0: i32, %arg1: i32, %arg2: i32) -> (i32, i32, i32) {
    %c0_i32 = arith.constant 0 : i32
    %c0_i32_0 = arith.constant 0 : i32
    %c0_i32_1 = arith.constant 0 : i32
    return %arg0, %c0_i32, %c0_i32_0 : i32, i32, i32
  }
  func.func @transform_3(%arg0: i32, %arg1: i32, %arg2: i32) -> (i32, i32, i32, i32) {
    %c0_i32 = arith.constant 0 : i32
    %c0_i32_0 = arith.constant 0 : i32
    return %arg0, %arg2, %arg1, %c0_i32 : i32, i32, i32, i32
  }
}

</mosaic_0001>

<bundles_post_ra>
// kernel: tpu_custom_call.1
= control target key start
LH: loop header
LB: loop body
LE: loop exit
PB: predicated region body
PF: predicated region fallthrough
CT: control target
= control target key end

     0   :  { %s1497_s0 = inlined_call_operand.hbm [shape: f32[2,128,128], index: 0, kind: input, shape index: {}]   ;;  %s1498_s1 = inlined_call_operand.hbm [shape: f32[2,128,128], index: 1, kind: input, shape index: {}]   ;;  %s1499_s2 = inlined_call_operand.hbm [shape: f32[2,128,128], index: 2, kind: input, shape index: {}]   ;;  %s1500_s3 = inlined_call_operand.hbm [shape: f32[2,2,128,128], index: 3, kind: output, shape index: {}]  }
   0x1   :  { %1515 = sst [smem:[#allocation25_spill]] %s1498_s1 }
   0x2   :  { %1516 = sst [smem:[#allocation26_spill]] %s1500_s3 }
   0x3   :  { %8 = vsyncpa [#allocation3], 0 }
   0x4   :  { %10 = vsyncpa [#allocation3 + $0x1], 0 }
   0x5   :  { %11 = vsyncpa [#allocation6], 0 }
   0x6   :  { %13 = vsyncpa [#allocation6 + $0x1], 0 }
   0x7   :  { %14 = vsyncpa [#allocation4], 0 }
   0x8   :  { %16 = vsyncpa [#allocation4 + $0x1], 0  ;;  %s1138_s12 = smov 0   ;;  %s1140_s13 = smov 0  }
   0x9   :  { %s1142_s14 = smov 0   ;;  %s1144_s15 = smov 0  }
   0xa   :  { %s1146_s16 = smov 0   ;;  %s1148_s17 = smov 0  }
   0xb   :  { %s1150_s18 = smov 0   ;;  %s1152_s19 = smov 0  }
   0xc   :  { %s1154_s20 = smov 0   ;;  %s1156_s21 = smov 0  }
   0xd   :  { %s1158_s22 = smov 0   ;;  %s1160_s23 = smov 0  }
   0xe   :  { %s1162_s24 = smov 0   ;;  %s1164_s25 = smov 0  }
   0xf LB: > { %1517 = sst [smem:[#allocation13_spill]] %s1060_s12  ;;  %s1207_s26 = sadd.s32 4294967295, %s1112_s25   ;;  %s1112_s25 = sphi %s1164_s25, %s22_s25   ;;  %s1108_s24 = sphi %s1162_s24, %s1555_s24   ;;  %s1104_s23 = sphi %s1160_s23, %s1554_s23   ;;  %s1100_s22 = sphi %s1158_s22, %s1553_s22   ;;  %s1096_s21 = sphi %s1156_s21, %s1552_s21   ;;  %s1092_s20 = sphi %s1154_s20, %s1551_s20   ;;  %s1088_s19 = sphi %s1152_s19, %s1561_s19   ;;  %s1084_s18 = sphi %s1150_s18, %s1560_s18   ;;  %s1080_s17 = sphi %s1148_s17, %s1549_s17   ;;  %s1076_s16 = sphi %s1146_s16, %s1559_s16   ;;  %s1072_s15 = sphi %s1144_s15, %s1558_s15   ;;  %s1068_s14 = sphi %s1142_s14, %s1547_s14   ;;  %s1064_s13 = sphi %s1140_s13, %s1557_s13   ;;  %s1060_s12 = sphi %s1138_s12, %s1556_s12  }
  0x10   : > { %1518 = sst [smem:[#allocation14_spill]] %s1068_s14  ;;  %s34_s27 = sadd.s32 1, %s1104_s23 }
  0x11   : > { %1519 = sst [smem:[#allocation15_spill]] %s1080_s17  ;;  %p1210_p0 = scmp.ge.s32.totalorder %s34_s27, 2 }
  0x12   : > { %1520 = sst [smem:[#allocation16_spill]] %s1092_s20  ;;  %p58_p1 = scmp.eq.s32.totalorder %s1112_s25, 0 }
  0x13   : > { %1521 = sst [smem:[#allocation17_spill]] %s1100_s22  ;;  %p64_p2 = scmp.eq.s32.totalorder %s1207_s26, 0 }
  0x14   : > { %1522 = sst [smem:[#allocation18_spill]] %s1104_s23  ;;  %s76_s29 = sadd.s32 1, %s1080_s17 }
  0x15   : > { %1523 = sst [smem:[#allocation19_spill]] %s1108_s24  ;;  %s1563_s27 = smov (%p1210_p0, %s34_s27), 0 }
  0x16   : > { %1525 = sst [smem:[#allocation20_spill]] %s1563_s27  ;;  %p83_p3 = scmp.ne.s32.totalorder %s1080_s17, %s1076_s16 }
  0x17   : > { %p89_p4 = scmp.ne.s32.totalorder %s1076_s16, %s1072_s15  ;;  %s1226_s30 = ssub.s32 %s1104_s23, %s1563_s27 }
  0x18   : > { %p143_p5 = scmp.eq.s32.totalorder %s1207_s26, 3  ;;  %p74_p6 = scmp.eq.s32.totalorder %s1226_s30, 0 }
  0x19   : > { %p1232_p7 = por %p83_p3, %p58_p1  ;;  %p1238_p8 = por %p89_p4, %p64_p2 }
  0x1a   : > { %s1243_s6 = scalar_select %p74_p6, %s1080_s17, %s76_s29  }
  0x1b   : > { %p1503_p9 = scmp.lt.s32.totalorder %s1112_s25, 4  ;;  %s193_s7 = sand.u32 1, %s1112_s25  }
  0x1c   : > { %1528 = sst [smem:[#allocation21_spill]] %s1243_s6  ;;  %s195_s8 = sand.u32 1, %s1080_s17  }
  0x1d   : > { %s660_s9 = sshll.u32 %s195_s8, 7  ;;  %s678_s10 = sshll.u32 %s1104_s23, 7 }
  0x1e   : > { %s1529_s1 = sld [smem:[#allocation25_spill]]  ;;  %s197_s22 = scalar_lea.vmem [#allocation5], %s660_s9 }
  0x1f   : > { %s205_s29 = sshll.u32 %s197_s22, 4  ;;  %p740_p10 = pnand %p1503_p9, %p1232_p7  ;;  %s206_s29 = int_to_ptr.vmem [resolvable:$true] %s205_s29 }
  0x20   : > { %p666_p11 = scmp.ge.s32.totalorder %s1112_s25, 1  ;;  %p235_p12 = scmp.lt.s32.totalorder %s1112_s25, 5 }
  0x21   : > { %s1258_s8 = scalar_lea.sflag [#allocation6], %s193_s7  ;;  %s1506_s22 = smov 8  }
  0x22   : > { %p1264_p13 = pnand %p666_p11, %p235_p12  ;;  %s654_s9 = sadd.s32 4294967294, %s1112_s25  }
  0x23   : > { %s41_s7 = sadd.s32 1, %s1108_s24  ;;  %p57_p3 = scmp.ne.s32.totalorder %s1092_s20, %s1088_s19 }
  0x24   : > { %s202_s27 = scalar_lea.hbm %s1529_s1, %s678_s10  ;;  %s50_s10 = sadd.s32 1, %s1092_s20 }
  0x25   : > { %s203_s3 = sshll.u32 %s202_s27, 4  ;;  %s1504_s27 = smov 128   ;;  %s204_s3 = int_to_ptr.hbm [resolvable:$true] %s203_s3 }
  0x26   : > { %742 = dma.hbm_to_vmem [thread:$0]  (!%p740_p10), %s204_s3, 2048, %s206_s29, %s1258_s8, %s1504_s27, %s1504_s27, %s1506_s22  }
  0x27   : > { %s1565_s7 = smov (!%p1210_p0, %s41_s7), %s1108_s24  ;;  %p63_p4 = scmp.ne.s32.totalorder %s1088_s19, %s1084_s18 }
  0x28   : > { %p43_p6 = scmp.ge.s32.totalorder %s1565_s7, 2  ;;  %s132_s11 = sadd.s32 1, %s1068_s14 }
  0x29   : > { %p1281_p7 = por %p58_p1, %p57_p3  ;;  %p1287_p10 = por %p64_p2, %p63_p4 }
  0x2a   : > { %s1567_s7 = smov (%p43_p6, %s1565_s7), 0  ;;  %p142_p0 = scmp.ne.s32.totalorder %s1068_s14, %s1064_s13 }
  0x2b   : > { %1533 = sst [smem:[#allocation22_spill]] %s1567_s7  ;;  %p148_p11 = scmp.ne.s32.totalorder %s1064_s13, %s1060_s12 }
  0x2c   : > { %s45_s18 = ssub.s32 %s1108_s24, %s1567_s7  ;;  %p149_p12 = scmp.eq.s32.totalorder %s654_s9, 3 }
  0x2d   : > { %p48_p9 = scmp.eq.s32.totalorder %s45_s18, 0  ;;  %s127_s28 = sor.u32 %s1226_s30, %s45_s18 }
  0x2e   : > { %p130_p1 = scmp.eq.s32.totalorder %s127_s28, 0  ;;  %p1302_p3 = por %p143_p5, %p142_p0 }
  0x2f   : > { %s1307_s27 = scalar_select %p48_p9, %s1092_s20, %s50_s10  }
  0x30   : > { %s1310_s22 = scalar_select %p130_p1, %s1068_s14, %s132_s11  }
  0x31   : > { %1535 = sst [smem:[#allocation23_spill]] %s1307_s27  ;;  %p1312_p2 = por %p149_p12, %p148_p11 }
  0x32   : > { %1536 = sst [smem:[#allocation24_spill]] %s1310_s22  ;;  %s169_s7 = sand.u32 1, %s1092_s20  }
  0x33   : > { %s657_s9 = sshll.u32 %s169_s7, 7  ;;  %s677_s23 = sshll.u32 %s1108_s24, 7 }
  0x34   : > { %s180_s30 = scalar_lea.hbm %s1497_s0, %s677_s23  ;;  %s173_s18 = scalar_lea.vmem [#allocation2], %s657_s9 }
  0x35   : > { %s183_s28 = sshll.u32 %s173_s18, 4  ;;  %s181_s12 = sshll.u32 %s180_s30, 4  ;;  %s184_s28 = int_to_ptr.vmem [resolvable:$true] %s183_s28  ;;  %s182_s12 = int_to_ptr.hbm [resolvable:$true] %s181_s12 }
  0x36   : > { %p1538_p5 = scmp.lt.s32.totalorder %s1112_s25, 4  ;;  %s224_s27 = scalar_lea.hbm %s1499_s2, %s677_s23 }
  0x37   : > { %s225_s20 = sshll.u32 %s224_s27, 4  ;;  %s170_s22 = scalar_lea.sflag [#allocation3], %s169_s7  ;;  %s226_s20 = int_to_ptr.hbm [resolvable:$true] %s225_s20 }
  0x38   : > { %p737_p9 = pnand %p1538_p5, %p1281_p7  ;;  %s1539_s24 = smov 8  }
  0x39   : > { %s1540_s14 = smov 128   ;;  %s219_s17 = scalar_lea.vmem [#allocation7], %s657_s9 }
  0x3a   : > { %739 = dma.hbm_to_vmem [thread:$0]  (!%p737_p9), %s182_s12, 2048, %s184_s28, %s170_s22, %s1540_s14, %s1540_s14, %s1539_s24  }
  0x3b   : > { %s227_s6 = sshll.u32 %s219_s17, 4  ;;  %239 = sbr.rel (%p1264_p13) target bundleno = 461 (0x1cd), region = 32  ;;  %s228_s6 = int_to_ptr.vmem [resolvable:$true] %s227_s6 }
  0x3c   : > { %745 = dma.hbm_to_vmem [thread:$0]  (!%p737_p9), %s226_s20, 2048, %s228_s6, %s1258_s8, %s1540_s14, %s1540_s14, %s1539_s24  }
  0x3d   : > { %s241_s23 = sand.u32 (!%p1264_p13), 1, %s1088_s19  }
  0x3e   : > { %s667_s27 = sshll.u32 (!%p1264_p13), %s241_s23, 7  ;;  %s242_s7 = scalar_lea.sflag (!%p1264_p13), [#allocation3], %s241_s23 }
  0x3f   : > { %s1338_s3 = scalar_lea.vmem (!%p1264_p13), [#allocation2], %s667_s27 }
  0x40   : > { %1043 = dma.done.wait (%p1287_p10), %s242_s7, 2048  }
  0x41   : > { %1045 = vsyncadd (%p1287_p10), %s242_s7, 4294965248  ;;  %s251_s12 = sand.u32 1, %s1207_s26   ;;  %s253_s14 = sand.u32 1, %s1076_s16  }
  0x42   : > { %s668_s20 = sshll.u32 %s253_s14, 7  ;;  %s252_s24 = scalar_lea.sflag [#allocation6], %s251_s12 }
  0x43   : > { %s1346_s8 = scalar_lea.vmem [#allocation5], %s668_s20 }
  0x44   : > { %1047 = dma.done.wait (%p1238_p8), %s252_s24, 2048  }
  0x45   : > { %1049 = vsyncadd (%p1238_p8), %s252_s24, 4294965248  ;;  %s1352_s22 = scalar_lea.vmem [#allocation7], %s667_s27 }
  0x46   : > { %1051 = dma.done.wait (%p1287_p10), %s252_s24, 2048  }
  0x47   : > { %1053 = vsyncadd (%p1287_p10), %s252_s24, 4294965248  ;;  %v332_v0 = vld [vmem:[%s1346_s8 + $0x78] sm:$0xff]  ;;  %v331_v1 = vld [vmem:[%s1346_s8 + $0x70] sm:$0xff]  ;;  %s296_s26 = sand.u32 1, %s1064_s13   ;;  %s1541_s15 = sld [smem:[#allocation17_spill]] }
  0x48   : > { %349 = vmatpush.msra.mxu0 %v332_v0  ;;  %680 = vmatpush.msra.mxu3 %v332_v0  ;;  %v330_v2 = vld [vmem:[%s1346_s8 + $0x68] sm:$0xff]  ;;  %v329_v3 = vld [vmem:[%s1346_s8 + $0x60] sm:$0xff]  ;;  %v328_v4 = vld [vmem:[%s1346_s8 + $0x58] sm:$0xff]  ;;  %s670_s5 = sshll.u32 %s296_s26, 7  ;;  %s672_s9 = sshll.u32 %s1096_s21, 4 }
  0x49   : > { %v327_v5 = vld [vmem:[%s1346_s8 + $0x50] sm:$0xff]  ;;  %v326_v6 = vld [vmem:[%s1346_s8 + $0x48] sm:$0xff]  ;;  %v325_v7 = vld [vmem:[%s1346_s8 + $0x40] sm:$0xff]  ;;  %s1409_s4 = scalar_lea.vmem [#allocation8], %s670_s5  ;;  %s1542_s17 = sld [smem:[#allocation26_spill]] }
  0x4a   : > { %350 = vmatpush.msra.mxu0 %v331_v1  ;;  %681 = vmatpush.msra.mxu3 %v331_v1  ;;  %v324_v8 = vld [vmem:[%s1346_s8 + $0x38] sm:$0xff]  ;;  %v323_v9 = vld [vmem:[%s1346_s8 + $0x30] sm:$0xff]  ;;  %v322_v10 = vld [vmem:[%s1346_s8 + $0x28] sm:$0xff]  ;;  %s512_s27 = sshll.u32 %s1409_s4, 4  ;;  %s496_s21 = scalar_lea.sflag [#allocation4], %s296_s26  ;;  %s513_s27 = int_to_ptr.vmem [resolvable:$true] %s512_s27 }
  0x4b   : > { %v321_v11 = vld [vmem:[%s1346_s8 + $0x20] sm:$0xff]  ;;  %v320_v12 = vld [vmem:[%s1346_s8 + $0x18] sm:$0xff]  ;;  %v319_v13 = vld [vmem:[%s1346_s8 + $0x10] sm:$0xff] }
  0x4c   : > { %351 = vmatpush.msra.mxu0 %v330_v2  ;;  %682 = vmatpush.msra.mxu3 %v330_v2  ;;  %v318_v14 = vld [vmem:[%s1346_s8 + $0x8] sm:$0xff]  ;;  %v317_v15 = vld [vmem:[%s1346_s8] sm:$0xff]  ;;  %v303_v18 = vld [vmem:[%s1338_s3 + $0x10] sm:$0xff] }
  0x4d   : > { %v301_v16 = vld [vmem:[%s1338_s3] sm:$0xff]  ;;  %v302_v17 = vld [vmem:[%s1338_s3 + $0x8] sm:$0xff]  ;;  %v311_v19 = vld [vmem:[%s1338_s3 + $0x50] sm:$0xff]  ;;  %s673_s30 = sshll.u32 %s1541_s15, 5 }
  0x4e   : > { %352 = vmatpush.msra.mxu0 %v329_v3  ;;  %683 = vmatpush.msra.mxu3 %v329_v3  ;;  %v304_v20 = vld [vmem:[%s1338_s3 + $0x18] sm:$0xff]  ;;  %v305_v23 = vld [vmem:[%s1338_s3 + $0x20] sm:$0xff]  ;;  %v347_v25 = vld [vmem:[%s1352_s22 + $0x70] sm:$0xff]  ;;  %s509_s18 = sadd.s32 %s673_s30, %s672_s9 }
  0x4f   : > { %v312_v21 = vld [vmem:[%s1338_s3 + $0x58] sm:$0xff]  ;;  %v313_v24 = vld [vmem:[%s1338_s3 + $0x60] sm:$0xff]  ;;  %v346_v26 = vld [vmem:[%s1352_s22 + $0x68] sm:$0xff]  ;;  %s674_s28 = sshll.u32 %s509_s18, 3  ;;  %s1543_s6 = smov %s1542_s17 }
  0x50   : > { %353 = vmatpush.msra.mxu0 %v328_v4  ;;  %684 = vmatpush.msra.mxu3 %v328_v4  ;;  %v348_v22 = vld [vmem:[%s1352_s22 + $0x78] sm:$0xff]  ;;  %v306_v27 = vld [vmem:[%s1338_s3 + $0x28] sm:$0xff]  ;;  %v345_v29 = vld [vmem:[%s1352_s22 + $0x60] sm:$0xff]  ;;  %s511_s23 = scalar_lea.hbm %s1542_s17, %s674_s28  ;;  %s978_s24 = scalar_lea.hbm %s1543_s6, 512 }
  0x51   : > { %414 = vmatpush.xpose.msra.mxu1 %v348_v22  ;;  %696 = vmatpush.xpose.msra.mxu2 %v348_v22  ;;  %v314_v28 = vld [vmem:[%s1338_s3 + $0x68] sm:$0xff]  ;;  %v344_v30 = vld [vmem:[%s1352_s22 + $0x58] sm:$0xff]  ;;  %v307_v31 = vld [vmem:[%s1338_s3 + $0x30] sm:$0xff]  ;;  %s514_s7 = sshll.u32 %s511_s23, 4  ;;  %s515_s7 = int_to_ptr.hbm [resolvable:$true] %s514_s7 }
  0x52   : > { %354 = vmatpush.msra.mxu0 %v327_v5  ;;  %685 = vmatpush.msra.mxu3 %v327_v5  ;;  %v315_v32 = vld [vmem:[%s1338_s3 + $0x70] sm:$0xff]  ;;  %v342_v34 = vld [vmem:[%s1352_s22 + $0x48] sm:$0xff]  ;;  %v308_v35 = vld [vmem:[%s1338_s3 + $0x38] sm:$0xff] }
  0x53   : > { %v343_v33 = vld [vmem:[%s1352_s22 + $0x50] sm:$0xff]  ;;  %v316_v36 = vld [vmem:[%s1338_s3 + $0x78] sm:$0xff]  ;;  %v341_v37 = vld [vmem:[%s1352_s22 + $0x40] sm:$0xff] }
  0x54   : > { %355 = vmatpush.msra.mxu0 %v326_v6  ;;  %686 = vmatpush.msra.mxu3 %v326_v6  ;;  %v340_v38 = vld [vmem:[%s1352_s22 + $0x38] sm:$0xff]  ;;  %v309_v39 = vld [vmem:[%s1338_s3 + $0x40] sm:$0xff]  ;;  %v339_v40 = vld [vmem:[%s1352_s22 + $0x30] sm:$0xff] }
  0x55   : > { %415 = vmatpush.xpose.msra.mxu1 %v347_v25  ;;  %698 = vmatpush.xpose.msra.mxu2 %v347_v25  ;;  %v338_v41 = vld [vmem:[%s1352_s22 + $0x28] sm:$0xff]  ;;  %v337_v43 = vld [vmem:[%s1352_s22 + $0x20] sm:$0xff]  ;;  %v336_v44 = vld [vmem:[%s1352_s22 + $0x18] sm:$0xff] }
  0x56   : > { %356 = vmatpush.msra.mxu0 %v325_v7  ;;  %687 = vmatpush.msra.mxu3 %v325_v7  ;;  %v310_v42 = vld [vmem:[%s1338_s3 + $0x48] sm:$0xff]  ;;  %v335_v45 = vld [vmem:[%s1352_s22 + $0x10] sm:$0xff]  ;;  %v333_v47 = vld [vmem:[%s1352_s22] sm:$0xff]  ;;  %s972_s3 = sshra.s32 %s515_s7, 4  ;;  %s973_s3 = int_to_ptr.hbm [resolvable:$true] %s972_s3 }
  0x57   : > { %v334_v46 = vld [vmem:[%s1352_s22 + $0x8] sm:$0xff]  ;;  %s974_s12 = scalar_lea.hbm %s973_s3, 128  ;;  %p979_p6 = scmp.lt.s32.totalorder %s973_s3, %s1543_s6 }
  0x58   : > { %357 = vmatpush.msra.mxu0 %v324_v8  ;;  %688 = vmatpush.msra.mxu3 %v324_v8  ;;  %p975_p8 = scmp.ne.s32.totalorder %s973_s3, %s974_s12  ;;  %p980_p7 = scmp.lt.s32.totalorder %s978_s24, %s974_s12 }
  0x59   : > { %416 = vmatpush.xpose.msra.mxu1 %v346_v26  ;;  %700 = vmatpush.xpose.msra.mxu2 %v346_v26 }
  0x5a   : > { %358 = vmatpush.msra.mxu0 %v323_v9  ;;  %689 = vmatpush.msra.mxu3 %v323_v9  ;;  %p976_p13 = pnand %p975_p8, %p1302_p3  ;;  %p981_p10 = por %p980_p7, %p979_p6 }
  0x5c   : > { %359 = vmatpush.msra.mxu0 %v322_v10  ;;  %690 = vmatpush.msra.mxu3 %v322_v10  ;;  %p977_p4 = pneg %p976_p13 }
  0x5d   : > { %417 = vmatpush.xpose.msra.mxu1 %v345_v29  ;;  %702 = vmatpush.xpose.msra.mxu2 %v345_v29 }
  0x5e   : > { %360 = vmatpush.msra.mxu0 %v321_v11  ;;  %691 = vmatpush.msra.mxu3 %v321_v11  ;;  %p982_p0 = pnand %p981_p10, %p977_p4 }
  0x60   : > { %361 = vmatpush.msra.mxu0 %v320_v12  ;;  %692 = vmatpush.msra.mxu3 %v320_v12 }
  0x61   : > { %418 = vmatpush.xpose.msra.mxu1 %v344_v30  ;;  %704 = vmatpush.xpose.msra.mxu2 %v344_v30 }
  0x62   : > { %362 = vmatpush.msra.mxu0 %v319_v13  ;;  %693 = vmatpush.msra.mxu3 %v319_v13 }
  0x64   : > { %363 = vmatpush.msra.mxu0 %v318_v14  ;;  %694 = vmatpush.msra.mxu3 %v318_v14 }
  0x65   : > { %419 = vmatpush.xpose.msra.mxu1 %v343_v33  ;;  %706 = vmatpush.xpose.msra.mxu2 %v343_v33 }
  0x66   : > { %364 = vmatpush.msra.mxu0 %v317_v15  ;;  %695 = vmatpush.msra.mxu3 %v317_v15 }
  0x67   : > { %365 = vmatmul.f32.vlgmr.msra.gmra.mxu0 %v301_v16  ;;  %395 = vmatmul.f32.vlgmr.msra.gmra.mxu3 %v311_v19 }
  0x68   : > { %697 = vmatpush.xpose.msrb.mxu3 %v348_v22 }
  0x69   : > { %420 = vmatpush.xpose.msra.mxu1 %v342_v34  ;;  %708 = vmatpush.xpose.msra.mxu2 %v342_v34 }
  0x6c   : > { %699 = vmatpush.xpose.msrb.mxu3 %v347_v25 }
  0x6d   : > { %421 = vmatpush.xpose.msra.mxu1 %v341_v37  ;;  %710 = vmatpush.xpose.msra.mxu2 %v341_v37 }
  0x6f   : > { %368 = vmatmul.f32.gmra.mxu0 %v302_v17  ;;  %398 = vmatmul.f32.gmra.mxu3 %v312_v21 }
  0x70   : > { %701 = vmatpush.xpose.msrb.mxu3 %v346_v26 }
  0x71   : > { %422 = vmatpush.xpose.msra.mxu1 %v340_v38  ;;  %712 = vmatpush.xpose.msra.mxu2 %v340_v38 }
  0x74   : > { %703 = vmatpush.xpose.msrb.mxu3 %v345_v29 }
  0x75   : > { %423 = vmatpush.xpose.msra.mxu1 %v339_v40  ;;  %714 = vmatpush.xpose.msra.mxu2 %v339_v40 }
  0x77   : > { %371 = vmatmul.f32.gmra.mxu0 %v303_v18  ;;  %401 = vmatmul.f32.gmra.mxu3 %v313_v24 }
  0x78   : > { %705 = vmatpush.xpose.msrb.mxu3 %v344_v30 }
  0x79   : > { %424 = vmatpush.xpose.msra.mxu1 %v338_v41  ;;  %716 = vmatpush.xpose.msra.mxu2 %v338_v41 }
  0x7c   : > { %707 = vmatpush.xpose.msrb.mxu3 %v343_v33 }
  0x7d   : > { %425 = vmatpush.xpose.msra.mxu1 %v337_v43  ;;  %718 = vmatpush.xpose.msra.mxu2 %v337_v43 }
  0x7f   : > { %374 = vmatmul.f32.gmra.mxu0 %v304_v20  ;;  %404 = vmatmul.f32.gmra.mxu3 %v314_v28 }
  0x80   : > { %709 = vmatpush.xpose.msrb.mxu3 %v342_v34 }
  0x81   : > { %426 = vmatpush.xpose.msra.mxu1 %v336_v44  ;;  %720 = vmatpush.xpose.msra.mxu2 %v336_v44 }
  0x84   : > { %711 = vmatpush.xpose.msrb.mxu3 %v341_v37 }
  0x85   : > { %427 = vmatpush.xpose.msra.mxu1 %v335_v45  ;;  %722 = vmatpush.xpose.msra.mxu2 %v335_v45 }
  0x87   : > { %377 = vmatmul.f32.gmra.mxu0 %v305_v23  ;;  %407 = vmatmul.f32.gmra.mxu3 %v315_v32 }
  0x88   : > { %713 = vmatpush.xpose.msrb.mxu3 %v340_v38 }
  0x89   : > { %428 = vmatpush.xpose.msra.mxu1 %v334_v46  ;;  %724 = vmatpush.xpose.msra.mxu2 %v334_v46 }
  0x8c   : > { %715 = vmatpush.xpose.msrb.mxu3 %v339_v40 }
  0x8d   : > { %429 = vmatpush.xpose.msra.mxu1 %v333_v47  ;;  %726 = vmatpush.xpose.msra.mxu2 %v333_v47 }
  0x8f   : > { %380 = vmatmul.f32.gmra.mxu0 %v306_v27  ;;  %410 = vmatmul.f32.gmra.mxu3 %v316_v36 }
  0x90   : > { %717 = vmatpush.xpose.msrb.mxu3 %v338_v41 }
  0x94   : > { %719 = vmatpush.xpose.msrb.mxu3 %v337_v43 }
  0x97   : > { %383 = vmatmul.f32.gmra.mxu0 %v307_v31 }
  0x98   : > { %721 = vmatpush.xpose.msrb.mxu3 %v336_v44 }
  0x9c   : > { %723 = vmatpush.xpose.msrb.mxu3 %v335_v45 }
  0x9f   : > { %386 = vmatmul.f32.gmra.mxu0 %v308_v35 }
  0xa0   : > { %725 = vmatpush.xpose.msrb.mxu3 %v334_v46 }
  0xa4   : > { %727 = vmatpush.xpose.msrb.mxu3 %v333_v47 }
  0xa7   : > { %389 = vmatmul.f32.gmra.mxu0 %v309_v39 }
  0xaf   : > { %392 = vmatmul.f32.gmra.mxu0 %v310_v42 }
  0xe4   : > { %v366_v48 = vpop.f32.mrf.mxu0 }
  0xe5   : > { %430 = vmatmul.f32.vlgmr.msra.gmra.mxu1 %v366_v48 }
  0xea   : > { %v396_v52 = vpop.f32.mrf.mxu3 }
  0xec   : > { %v369_v49 = vpop.f32.mrf.mxu0 }
  0xed   : > { %433 = vmatmul.f32.gmra.mxu1 %v369_v49 }
  0xf2   : > { %v399_v54 = vpop.f32.mrf.mxu3 }
  0xf4   : > { %v372_v50 = vpop.f32.mrf.mxu0 }
  0xf5   : > { %436 = vmatmul.f32.gmra.mxu1 %v372_v50 }
  0xfa   : > { %v402_v56 = vpop.f32.mrf.mxu3 }
  0xfc   : > { %v375_v51 = vpop.f32.mrf.mxu0 }
  0xfd   : > { %439 = vmatmul.f32.gmra.mxu1 %v375_v51 }
 0x102   : > { %v405_v58 = vpop.f32.mrf.mxu3 }
 0x103   : > { %469 = vmatmul.f32.vlgmr.msrb.gmra.mxu3 %v405_v58 }
 0x104   : > { %v378_v53 = vpop.f32.mrf.mxu0 }
 0x105   : > { %442 = vmatmul.f32.gmra.mxu1 %v378_v53 }
 0x10a   : > { %v408_v60 = vpop.f32.mrf.mxu3 }
 0x10b   : > { %472 = vmatmul.f32.gmra.mxu3 %v408_v60 }
 0x10c   : > { %v381_v55 = vpop.f32.mrf.mxu0 }
 0x10d   : > { %445 = vmatmul.f32.gmra.mxu1 %v381_v55 }
 0x112   : > { %v411_v62 = vpop.f32.mrf.mxu3 }
 0x113   : > { %475 = vmatmul.f32.gmra.mxu3 %v411_v62 }
 0x114   : > { %v384_v57 = vpop.f32.mrf.mxu0 }
 0x115   : > { %448 = vmatmul.f32.vlgmr.msra.gmra.mxu2 %v384_v57 }
 0x11c   : > { %v387_v59 = vpop.f32.mrf.mxu0 }
 0x11d   : > { %451 = vmatmul.f32.gmra.mxu2 %v387_v59 }
 0x124   : > { %v390_v61 = vpop.f32.mrf.mxu0 }
 0x125   : > { %454 = vmatmul.f32.gmra.mxu2 %v390_v61 }
 0x12c   : > { %v393_v63 = vpop.f32.mrf.mxu0 }
 0x12d   : > { %457 = vmatmul.f32.gmra.mxu2 %v393_v63 }
 0x135   : > { %460 = vmatmul.f32.gmra.mxu2 %v396_v52 }
 0x13d   : > { %463 = vmatmul.f32.gmra.mxu2 %v399_v54 }
 0x145   : > { %466 = vmatmul.f32.gmra.mxu2 %v402_v56 }
 0x162   : > { %v431_v0 = vpop.f32.mrf.mxu1 }
 0x163   : > { %479 = vst [vmem:[%s1409_s4] sm:$0xff] %v431_v0 }
 0x16a   : > { %v434_v1 = vpop.f32.mrf.mxu1 }
 0x16b   : > { %480 = vst [vmem:[%s1409_s4 + $0x8] sm:$0xff] %v434_v1 }
 0x172   : > { %v437_v2 = vpop.f32.mrf.mxu1 }
 0x173   : > { %481 = vst [vmem:[%s1409_s4 + $0x10] sm:$0xff] %v437_v2 }
 0x17a   : > { %v440_v3 = vpop.f32.mrf.mxu1 }
 0x17b   : > { %482 = vst [vmem:[%s1409_s4 + $0x18] sm:$0xff] %v440_v3 }
 0x182   : > { %v443_v4 = vpop.f32.mrf.mxu1 }
 0x183   : > { %483 = vst [vmem:[%s1409_s4 + $0x20] sm:$0xff] %v443_v4 }
 0x186   : > { %v470_v7 = vpop.f32.mrf.mxu3 }
 0x187   : > { %492 = vst [vmem:[%s1409_s4 + $0x68] sm:$0xff] %v470_v7 }
 0x18a   : > { %v446_v5 = vpop.f32.mrf.mxu1 }
 0x18b   : > { %484 = vst [vmem:[%s1409_s4 + $0x28] sm:$0xff] %v446_v5 }
 0x18e   : > { %v473_v9 = vpop.f32.mrf.mxu3 }
 0x18f   : > { %493 = vst [vmem:[%s1409_s4 + $0x70] sm:$0xff] %v473_v9 }
 0x196   : > { %v476_v11 = vpop.f32.mrf.mxu3 }
 0x197   : > { %494 = vst [vmem:[%s1409_s4 + $0x78] sm:$0xff] %v476_v11 }
 0x198   : > { %v449_v6 = vpop.f32.mrf.mxu2 }
 0x199   : > { %485 = vst [vmem:[%s1409_s4 + $0x30] sm:$0xff] %v449_v6 }
 0x1a0   : > { %v452_v8 = vpop.f32.mrf.mxu2 }
 0x1a1   : > { %486 = vst [vmem:[%s1409_s4 + $0x38] sm:$0xff] %v452_v8 }
 0x1a8   : > { %v455_v10 = vpop.f32.mrf.mxu2 }
 0x1a9   : > { %487 = vst [vmem:[%s1409_s4 + $0x40] sm:$0xff] %v455_v10 }
 0x1b0   : > { %v458_v12 = vpop.f32.mrf.mxu2 }
 0x1b1   : > { %488 = vst [vmem:[%s1409_s4 + $0x48] sm:$0xff] %v458_v12 }
 0x1b8   : > { %v461_v13 = vpop.f32.mrf.mxu2 }
 0x1b9   : > { %489 = vst [vmem:[%s1409_s4 + $0x50] sm:$0xff] %v461_v13 }
 0x1c0   : > { %v464_v14 = vpop.f32.mrf.mxu2 }
 0x1c1   : > { %490 = vst [vmem:[%s1409_s4 + $0x58] sm:$0xff] %v464_v14 }
 0x1c8   : > { %v467_v15 = vpop.f32.mrf.mxu2 }
 0x1c9   : > { %491 = vst [vmem:[%s1409_s4 + $0x60] sm:$0xff] %v467_v15 }
 0x1ca   : > { %985 = shalt.err (!%p982_p0)
}
 0x1cb   : > { %s1116_s26 = smov 128   ;;  %s1117_s5 = smov 8  }
 0x1cc   : > { %734 = dma.vmem_to_hbm [thread:$0]  (%p1302_p3), %s513_s27, 2048, %s515_s7, %s496_s21, %s1116_s26, %s1116_s26, %s1117_s5  }
 0x1cd PF: > { %s1544_s4 = sld [smem:[#allocation13_spill]]  ;;  %p751_p11 = scmp.ge.s32.totalorder %s1112_s25, 2 }
 0x1cf   : > { %p747_p12 = pnand %p751_p11, %p1312_p2 }
 0x1d1   : > { %p748_p1 = pneg %p747_p12 }
 0x1d3   : > { %s529_s15 = sand.u32 1, %s1544_s4  }
 0x1d4   : > { %s530_s9 = scalar_lea.sflag [#allocation4], %s529_s15 }
 0x1d5   : > { %1055 = dma.done.wait (%p748_p1), %s530_s9, 2048  }
 0x1d6   : > { %1057 = vsyncadd (%p748_p1), %s530_s9, 4294965248  ;;  %s22_s25 = sadd.s32 1, %s1112_s25   ;;  %s1546_s29 = sld [smem:[#allocation14_spill]] }
 0x1d7   : > { %p1450_p5 = scmp.ge.s32.totalorder %s22_s25, 6   ;;  %s1547_s14 = sld [smem:[#allocation24_spill]] }
 0x1d8   : > { %s1548_s18 = sld [smem:[#allocation15_spill]]  ;;  %s1556_s12 = smov %s1064_s13 }
 0x1d9   : > { %s1549_s17 = sld [smem:[#allocation21_spill]]  ;;  %s1558_s15 = smov %s1076_s16 }
 0x1da   : > { %s1550_s28 = sld [smem:[#allocation16_spill]] }
 0x1db   : > { %s1551_s20 = sld [smem:[#allocation23_spill]] }
 0x1dc   : > { %s1552_s21 = sld [smem:[#allocation18_spill]]  ;;  %s1557_s13 = smov %s1546_s29 }
 0x1dd   : > { %s1553_s22 = sld [smem:[#allocation19_spill]]  ;;  %21 = sbr.rel (!%p1450_p5) target bundleno = 15 (0xf), region = 101 }
 0x1de   : > { %s1554_s23 = sld [smem:[#allocation20_spill]]  ;;  %s1559_s16 = smov %s1548_s18 }
 0x1df   : > { %s1555_s24 = sld [smem:[#allocation22_spill]]  ;;  %s1560_s18 = smov %s1088_s19 }
 0x1e0   : > { %s1561_s19 = smov %s1550_s28 }
 0x1e2   :  { %536 = vsyncpa [#allocation3], 1 }
 0x1e3   :  { %538 = vsyncpa [#allocation3 + $0x1], 1 }
 0x1e4   :  { %539 = vsyncpa [#allocation6], 1 }
 0x1e5   :  { %541 = vsyncpa [#allocation6 + $0x1], 1 }
 0x1e6   :  { %542 = vsyncpa [#allocation4], 1 }
 0x1e7   :  { %544 = vsyncpa [#allocation4 + $0x1], 1 }

</bundles_post_ra>
